<compile_context>
chip_gen: v6e
topology: v6e:2x2x1
jax: 0.10.0
libtpu: 0.0.40
codegen_flags: <defaults>
</compile_context>

<pallas_src>
import functools

import jax
import jax.numpy as jnp
from jax.experimental import pallas as pl
from jax.experimental.pallas import tpu as pltpu

LEAKY_SLOPE = 0.01       # F.leaky_relu default negative_slope
NORM_EPS = 1e-12         # F.normalize default eps
DROPOUT_P = 0.0          # module default; p=0 -> identity


def _round_up(n: int, m: int) -> int:
    return ((n + m - 1) // m) * m


def mlp_one_layer_kernel(x_ref, w_ref, b_ref, o_ref):
    # x_ref: (TM, D_in_p) bf16   w_ref: (D_in_p, D_out_p) bf16   b_ref: (1, D_out_p) f32
    x = x_ref[...]
    w = w_ref[...]

    # MXU matmul: bf16 operands, f32 accumulation.
    y = jnp.dot(x, w, preferred_element_type=jnp.float32)
    y = y + b_ref[...]                                   # bias add in f32

    # leaky_relu (f32, VPU)
    y = jnp.where(y >= 0, y, LEAKY_SLOPE * y)

    # dropout with p=0 is identity (F.dropout(x, p=0) == x)

    # F.normalize: y / max(||y||_2, eps)  ==  y * rsqrt(max(sum(y^2), eps^2))
    sumsq = jnp.sum(y * y, axis=-1, keepdims=True)
    inv_norm = jax.lax.rsqrt(jnp.maximum(sumsq, NORM_EPS * NORM_EPS))
    o_ref[...] = (y * inv_norm).astype(o_ref.dtype)


@functools.partial(jax.jit, static_argnames=("block_rows",))
def mlp_one_layer(x, w, b, *, block_rows: int = 256):
    """x: (B, D_in) f32; w: (D_in, D_out) f32 (transpose of torch Linear weight);
    b: (D_out,) f32 -> (B, D_out) f32."""
    B, D_in = x.shape
    D_out = w.shape[1]

    # Lane-dense / MXU-friendly padding.
    D_in_p = _round_up(D_in, 128)
    D_out_p = _round_up(D_out, 128)
    tm = min(_round_up(B, 8), _round_up(block_rows, 8))
    B_p = _round_up(B, tm)
    grid = (B_p // tm,)

    # Zero-pad and cast matmul operands to bf16; bias stays f32.
    x_p = jnp.pad(x, ((0, B_p - B), (0, D_in_p - D_in))).astype(jnp.bfloat16)
    w_p = jnp.pad(w, ((0, D_in_p - D_in), (0, D_out_p - D_out))).astype(jnp.bfloat16)
    b_p = jnp.pad(b, (0, D_out_p - D_out)).astype(jnp.float32).reshape(1, D_out_p)

    # VMEM budget: double-buffered x/out tiles + resident weight/bias (count 2x to be safe).
    vmem_needed = (
        2 * tm * D_in_p * 2          # x tiles (bf16)
        + 2 * D_in_p * D_out_p * 2   # weight (bf16)
        + 2 * 1 * D_out_p * 4        # bias (f32)
        + 2 * tm * D_out_p * 4       # out tiles (f32)
    )
    vmem_limit = min(max(int(vmem_needed * 2), 32 << 20), 48 << 20)

    cost = pl.CostEstimate(
        flops=2 * B_p * D_in_p * D_out_p,
        transcendentals=B_p,  # one rsqrt per row
        bytes_accessed=(x_p.size * 2 + w_p.size * 2 + b_p.size * 4
                        + B_p * D_out_p * 4),
    )

    out_p = pl.pallas_call(
        mlp_one_layer_kernel,
        out_shape=jax.ShapeDtypeStruct((B_p, D_out_p), jnp.float32),
        grid=grid,
        in_specs=[
            pl.BlockSpec((tm, D_in_p), lambda i: (i, 0)),        # x: tiled over batch
            pl.BlockSpec((D_in_p, D_out_p), lambda i: (0, 0)),   # w: resident
            pl.BlockSpec((1, D_out_p), lambda i: (0, 0)),        # b: resident
        ],
        out_specs=pl.BlockSpec((tm, D_out_p), lambda i: (i, 0)),
        compiler_params=pltpu.CompilerParams(
            dimension_semantics=("parallel",),
            vmem_limit_bytes=vmem_limit,
        ),
        cost_estimate=cost,
    )(x_p, w_p, b_p)

    return out_p[:B, :D_out]


def init_params(key, input_size, output_size):
    # Deterministic init mimicking nn.Linear: U(-1/sqrt(in), 1/sqrt(in)).
    kw, kb = jax.random.split(key)
    bound = 1.0 / (input_size ** 0.5)
    # PyTorch stores weight as (out, in); we store its transpose (in, out).
    w = jax.random.uniform(kw, (input_size, output_size), jnp.float32, -bound, bound)
    b = jax.random.uniform(kb, (output_size,), jnp.float32, -bound, bound)
    return w, b


if __name__ == "__main__":
    key = jax.random.PRNGKey(0)
    k_x, k_p = jax.random.split(key)

    batch = 8
    input_size = 32
    output_size = 16

    x = jax.random.normal(k_x, (batch, input_size), jnp.float32)
    w, b = init_params(k_p, input_size, output_size)

    out = mlp_one_layer(x, w, b)
    jax.block_until_ready(out)

    # Pure-JAX reference of the same forward pass (bf16 matmul, f32 accumulate/epilogue).
    ref = jnp.dot(x.astype(jnp.bfloat16), w.astype(jnp.bfloat16),
                  preferred_element_type=jnp.float32) + b
    ref = jnp.where(ref >= 0, ref, LEAKY_SLOPE * ref)
    ref = ref * jax.lax.rsqrt(
        jnp.maximum(jnp.sum(ref * ref, axis=-1, keepdims=True), NORM_EPS * NORM_EPS))

    assert out.shape == (batch, output_size)
    assert jnp.allclose(out, ref, atol=1e-4, rtol=1e-4)

    print("KERNEL_OK")
</pallas_src>

<mosaic_0001>
module attributes {stable_mosaic.version = 11 : i64} {
  func.func @mlp_one_layer_kernel(%arg0: i32, %arg1: memref<8x128xbf16, #tpu.memory_space<vmem>>, %arg2: memref<128x128xbf16, #tpu.memory_space<vmem>>, %arg3: memref<1x128xf32, #tpu.memory_space<vmem>>, %arg4: memref<8x128xf32, #tpu.memory_space<vmem>>) attributes {dimension_semantics = [#tpu.dimension_semantics<parallel>], iteration_bounds = array<i64: 1>, scalar_prefetch = 0 : i64, scratch_operands = 0 : i64, tpu.core_type = #tpu.core_type<tc>, window_params = [{transform_indices = @transform_0, window_bounds = array<i64: 8, 128>}, {pipeline_mode = #tpu.pipeline_mode<synchronous>, transform_indices = @transform_1, window_bounds = array<i64: 128, 128>}, {pipeline_mode = #tpu.pipeline_mode<synchronous>, transform_indices = @transform_2, window_bounds = array<i64: 1, 128>}, {transform_indices = @transform_3, window_bounds = array<i64: 8, 128>}]} {
    %c0 = arith.constant 0 : index
    %c0_0 = arith.constant 0 : index
    %0 = vector.load %arg1[%c0, %c0_0] : memref<8x128xbf16, #tpu.memory_space<vmem>>, vector<8x128xbf16>
    %c0_1 = arith.constant 0 : index
    %c0_2 = arith.constant 0 : index
    %1 = vector.load %arg2[%c0_1, %c0_2] : memref<128x128xbf16, #tpu.memory_space<vmem>>, vector<128x128xbf16>
    %cst = arith.constant dense<0.000000e+00> : vector<8x128xf32>
    %2 = tpu.matmul %0, %1, %cst {dimension_numbers = #tpu.dot_dimension_numbers<[1], [0], [0], [1], [0, 0, 1, 1], [], []>} : vector<8x128xbf16>, vector<128x128xbf16>, vector<8x128xf32> -> vector<8x128xf32>
    %c0_3 = arith.constant 0 : index
    %c0_4 = arith.constant 0 : index
    %3 = vector.load %arg3[%c0_3, %c0_4] : memref<1x128xf32, #tpu.memory_space<vmem>>, vector<1x128xf32>
    %4 = vector.broadcast %3 : vector<1x128xf32> to vector<8x128xf32>
    %5 = arith.addf %2, %4 : vector<8x128xf32>
    %cst_5 = arith.constant 0.000000e+00 : f32
    %6 = vector.broadcast %cst_5 : f32 to vector<8x128xf32>
    %7 = arith.cmpf oge, %5, %6 : vector<8x128xf32>
    %cst_6 = arith.constant 0.00999999977 : f32
    %8 = vector.broadcast %cst_6 : f32 to vector<8x128xf32>
    %9 = arith.mulf %8, %5 : vector<8x128xf32>
    %10 = arith.select %7, %5, %9 : vector<8x128xi1>, vector<8x128xf32>
    %11 = arith.mulf %10, %10 : vector<8x128xf32>
    %cst_7 = arith.constant dense<0.000000e+00> : vector<8xf32>
    %12 = vector.multi_reduction <add>, %11, %cst_7 [1] : vector<8x128xf32> to vector<8xf32>
    %13 = vector.shape_cast %12 : vector<8xf32> to vector<8x1xf32>
    %cst_8 = arith.constant 1.000000e-24 : f32
    %14 = vector.broadcast %cst_8 : f32 to vector<8x1xf32>
    %15 = arith.maximumf %13, %14 : vector<8x1xf32>
    %16 = math.rsqrt %15 : vector<8x1xf32>
    %17 = vector.broadcast %16 : vector<8x1xf32> to vector<8x128xf32>
    %18 = arith.mulf %10, %17 : vector<8x128xf32>
    %c0_9 = arith.constant 0 : index
    %c0_10 = arith.constant 0 : index
    %19 = vector.load %arg4[%c0_9, %c0_10] : memref<8x128xf32, #tpu.memory_space<vmem>>, vector<8x128xf32>
    tpu.vector_store %arg4[%c0_9, %c0_10], %18 {strides = array<i32>} : memref<8x128xf32, #tpu.memory_space<vmem>>, vector<8x128xf32>,
    return
  }
  func.func @transform_0(%arg0: i32) -> (i32, i32) {
    %c0_i32 = arith.constant 0 : i32
    %c0_i32_0 = arith.constant 0 : i32
    return %arg0, %c0_i32 : i32, i32
  }
  func.func @transform_1(%arg0: i32) -> (i32, i32) {
    %c0_i32 = arith.constant 0 : i32
    %c0_i32_0 = arith.constant 0 : i32
    %c0_i32_1 = arith.constant 0 : i32
    return %c0_i32, %c0_i32_0 : i32, i32
  }
  func.func @transform_2(%arg0: i32) -> (i32, i32) {
    %c0_i32 = arith.constant 0 : i32
    %c0_i32_0 = arith.constant 0 : i32
    %c0_i32_1 = arith.constant 0 : i32
    return %c0_i32, %c0_i32_0 : i32, i32
  }
  func.func @transform_3(%arg0: i32) -> (i32, i32) {
    %c0_i32 = arith.constant 0 : i32
    %c0_i32_0 = arith.constant 0 : i32
    return %arg0, %c0_i32 : i32, i32
  }
}

</mosaic_0001>

<bundles_post_ra>
// kernel: mlp_one_layer.1
= control target key start
LH: loop header
LB: loop body
LE: loop exit
PB: predicated region body
PF: predicated region fallthrough
CT: control target
= control target key end

     0   :  { %v225_v1 = vmov 0.0   ;;  %vm226_vm0 = vmmov 0   ;;  %s281_s0 = inlined_call_operand.vmem [shape: bf16[8,128], index: 0, kind: input, shape index: {}]   ;;  %s282_s1 = inlined_call_operand.vmem [shape: bf16[128,128], index: 1, kind: input, shape index: {}]   ;;  %s283_s2 = inlined_call_operand.vmem [shape: f32[1,128], index: 2, kind: input, shape index: {}]   ;;  %s284_s3 = inlined_call_operand.hbm [shape: f32[8,128], index: 3, kind: output, shape index: {}]  }
   0x1   :  { %v193_v0 = vld [vmem:[%s282_s1 + $0x38] sm:$0xff]   ;;  %170 = vmatprep.subr.bf16.mxu0 %v225_v1  ;;  %v194_v2 = vld [vmem:[%s282_s1 + $0x30] sm:$0xff]   ;;  %186 = vmatprep.mubr.msk.bf16.mxu0 %vm226_vm0, %v225_v1  ;;  %v195_v3 = vld [vmem:[%s282_s1 + $0x28] sm:$0xff]  }
   0x2   :  { %171 = vmatpush3.bf16.msra.mxu0 %v193_v0 }
   0x3   :  { %172 = vmatprep.subr.bf16.mxu0 %v225_v1 }
   0x6   :  { %173 = vmatpush3.bf16.msra.mxu0 %v194_v2 }
   0x7   :  { %174 = vmatprep.subr.bf16.mxu0 %v225_v1 }
   0x8   :  { %8 = vsyncpa [#allocation3], 0  ;;  %v196_v4 = vld [vmem:[%s282_s1 + $0x20] sm:$0xff]   ;;  %v197_v5 = vld [vmem:[%s282_s1 + $0x18] sm:$0xff]  }
   0x9   :  { %v198_v6 = vld [vmem:[%s282_s1 + $0x10] sm:$0xff]   ;;  %v199_v7 = vld [vmem:[%s282_s1 + $0x8] sm:$0xff]   ;;  %v200_v8 = vld [vmem:[%s282_s1] sm:$0xff]   ;;  %s227_s1 = smov [#allocation2]  }
   0xa   :  { %175 = vmatpush3.bf16.msra.mxu0 %v195_v3  ;;  %v16_v9 = vld [vmem:[%s281_s0] sm:$0xf]  ;;  %s144_s0 = sshll.u32 %s227_s1, 4  ;;  %s145_s0 = int_to_ptr.vmem [resolvable:$true] %s144_s0 }
   0xb   :  { %176 = vmatprep.subr.bf16.mxu0 %v225_v1  ;;  %v152_v10 = vld [vmem:[%s283_s2] ss:$0 sm:$0xff]  ;;  %s203_s2 = scalar_lea.vmem %s145_s0, 128  ;;  %p208_p1 = scmp.lt.s32.totalorder %s145_s0, %s145_s0 }
   0xc   :  { %p204_p0 = scmp.ne.s32.totalorder %s145_s0, %s203_s2  ;;  %p209_p2 = scmp.lt.s32.totalorder %s203_s2, %s203_s2 }
   0xe   :  { %177 = vmatpush3.bf16.msra.mxu0 %v196_v4  ;;  %p210_p3 = por %p209_p2, %p208_p1 }
   0xf   :  { %178 = vmatprep.subr.bf16.mxu0 %v225_v1 }
  0x10   :  { %p211_p4 = pnand %p210_p3, %p204_p0 }
  0x12   :  { %179 = vmatpush3.bf16.msra.mxu0 %v197_v5 }
  0x13   :  { %180 = vmatprep.subr.bf16.mxu0 %v225_v1 }
  0x16   :  { %181 = vmatpush3.bf16.msra.mxu0 %v198_v6 }
  0x17   :  { %182 = vmatprep.subr.bf16.mxu0 %v225_v1 }
  0x1a   :  { %183 = vmatpush3.bf16.msra.mxu0 %v199_v7 }
  0x1b   :  { %184 = vmatprep.subr.bf16.mxu0 %v225_v1 }
  0x1e   :  { %185 = vmatpush3.bf16.msra.mxu0 %v200_v8 }
  0x21   :  { %187 = vmatmul.mubr.bf16.vlgmr.msra.gmra.mxu0 %v16_v9 }
  0xe1   :  { %v122_v11 = vpop.f32.mrf.mxu0 }
  0xe2   :  { %v123_v12 = vadd.f32 %v152_v10, %v122_v11 }
  0xe3   :  { %v188_v13 = vpop.f32.mrf.mxu0 }
  0xe4   :  { %v129_v14 = vmul.f32 0.01, %v123_v12  ;;  %vm128_vm1 = vcmp.ge.f32.partialorder %v123_v12, 0.0 }
  0xe5   :  { %v125_v15 = vpop.f32.mrf.mxu0 }
  0xe6   :  { %v130_v16 = vsel %vm128_vm1, %v123_v12, %v129_v14 }
  0xe7   :  { %v189_v17 = vpop.f32.mrf.mxu0  ;;  %v131_v18 = vmul.f32 %v130_v16, %v130_v16 }
  0xe9   :  { %132 = vadd.xlane.f32.xlu0 %v131_v18 }
 0x172   :  { %v133_v19 = vpop.xlane.xlu0 %132 }
 0x173   :  { %v134_v20 = vmax.f32 %v133_v19, 1e-24 }
 0x175   :  { %201 = vrsqrt.f32 %v134_v20 }
 0x182   :  { %v202_v21 = vpop.eup %201 }
 0x183   :  { %v136_v22 = vmul.f32 %v202_v21, %v130_v16 }
 0x185   :  { %137 = vst [vmem:[#allocation2] sm:$0xff] %v136_v22 }
 0x186   :  { %214 = shalt.err (!%p211_p4)
}
 0x187   :  { %147 = dma.vmem_to_hbm [thread:$0]  %s145_s0, 128, %s284_s3, [#allocation3]  }
 0x188   :  { %223 = dma.done.wait [#allocation3], 128  }
 0x189   :  { %224 = vsyncadd [#allocation3], 4294967168 }
 0x18a   :  { %151 = vsyncpa [#allocation3], 1 }

</bundles_post_ra>
